<compile_context>
chip_gen: v7x
topology: tpu7x:2x2x1
jax: 0.10.0
libtpu: 0.0.40
codegen_flags: <defaults>
</compile_context>

<pallas_src>
import functools

import jax
import jax.numpy as jnp
from jax.experimental import pallas as pl
from jax.experimental.pallas import tpu as pltpu


def _cb_softmax_bce_kernel(logits_ref, labels_ref, wex_ref, out_ref, *, epsilon):
    """Per-batch-tile partial sum of the class-balanced softmax-BCE loss.

    logits_ref : (TB, C)  input dtype (upcast to f32 in-kernel)
    labels_ref : (TB, 1)  int32 class ids (padded rows carry weight 0)
    wex_ref    : (TB, 1)  f32 per-example class-balanced weight
    out_ref    : (1,1,1)  f32 unnormalized partial sum for this tile
    """
    logits = logits_ref[...].astype(jnp.float32)            # (TB, C)
    lab = labels_ref[...]                                    # (TB, 1) int32
    w = wex_ref[...]                                         # (TB, 1) f32

    TB, C = logits.shape

    # Label-smoothed one-hot rebuilt in-kernel (cheap VPU work, saves a (B,C) DMA).
    col = jax.lax.broadcasted_iota(jnp.int32, (TB, C), 1)
    onehot = (col == lab).astype(jnp.float32)                # broadcast (TB,1) vs (TB,C)
    t = (1.0 - epsilon) * onehot + (epsilon / C)

    # Log-space softmax: exp + log per element, one log per row; no divide.
    m = jnp.max(logits, axis=1, keepdims=True)               # (TB, 1)
    z = logits - m
    e = jnp.exp(z)                                           # (TB, C)
    s = jnp.sum(e, axis=1, keepdims=True)                    # (TB, 1)
    log_s = jnp.log(s)                                       # (TB, 1)

    # torch F.binary_cross_entropy clamps log terms at -100; replicate.
    log_p = jnp.maximum(z - log_s, -100.0)                   # log(softmax)
    log_1mp = jnp.maximum(jnp.log(s - e) - log_s, -100.0)    # log(1 - softmax)

    # Per-example weight broadcasts from (TB,1); no explicit (TB,C) broadcast.
    loss = -w * (t * log_p + (1.0 - t) * log_1mp)            # (TB, C)

    # Lane-axis reduction first, then sublanes -> scalar partial for this tile.
    out_ref[...] = jnp.sum(jnp.sum(loss, axis=1, keepdims=True)).reshape(1, 1, 1)


def _round_up(x, m):
    return ((x + m - 1) // m) * m


def cb_loss(logits, labels, beta, gamma, epsilon=0.1, loss_type="softmax"):
    """JAX/Pallas equivalent of CB_loss.forward (default loss_type='softmax')."""
    if loss_type != "softmax":
        # TODO(synk): 'sigmoid' and 'focal' branches not implemented (module default is 'softmax').
        raise NotImplementedError("only loss_type='softmax' is implemented")

    B, C = logits.shape
    labels = labels.astype(jnp.int32)

    # ---- tiny O(B + C) glue: class-balanced weights + per-example weights ----
    counts = jnp.zeros((C,), jnp.float32).at[labels].add(1.0)          # samples_per_cls
    effective_num = 1.0 - jnp.power(jnp.float32(beta), counts)
    weights = (1.0 - beta) / (effective_num + 1e-8)
    weights = weights / jnp.sum(weights) * C                           # sums to C

    # w_i = sum_c weights[c] * smoothed_onehot[i,c] = (1-eps)*weights[label_i] + eps
    w_ex = ((1.0 - epsilon) * weights[labels] + epsilon).astype(jnp.float32)
    w_ex = w_ex.reshape(B, 1)
    labels2d = labels.reshape(B, 1)

    # ---- batch tiling: ~2 MiB of f32 logits per buffer, rows multiple of 8 ----
    bytes_per_row = 4 * C
    tb = max(8, (2 * 1024 * 1024) // bytes_per_row)
    tb = min(1024, (tb // 8) * 8)
    b_pad = _round_up(B, 8)
    tb = min(tb, b_pad)
    b_pad = _round_up(B, tb)
    num_tiles = b_pad // tb

    if b_pad != B:
        pad = b_pad - B
        logits = jnp.pad(logits, ((0, pad), (0, 0)))
        labels2d = jnp.pad(labels2d, ((0, pad), (0, 0)))
        w_ex = jnp.pad(w_ex, ((0, pad), (0, 0)))   # weight 0 -> padded rows contribute 0

    partials = pl.pallas_call(
        functools.partial(_cb_softmax_bce_kernel, epsilon=float(epsilon)),
        out_shape=jax.ShapeDtypeStruct((num_tiles, 1, 1), jnp.float32),
        grid=(num_tiles,),
        in_specs=[
            pl.BlockSpec((tb, C), lambda i: (i, 0)),
            pl.BlockSpec((tb, 1), lambda i: (i, 0)),
            pl.BlockSpec((tb, 1), lambda i: (i, 0)),
        ],
        out_specs=pl.BlockSpec((1, 1, 1), lambda i: (i, 0, 0)),
        compiler_params=pltpu.CompilerParams(
            dimension_semantics=("parallel",),
            vmem_limit_bytes=32 * 1024 * 1024,
        ),
    )(logits, labels2d, w_ex)

    # Final tiny reduction + mean normalization by the TRUE B*C (not padded size).
    return jnp.sum(partials) * (1.0 / (B * C))


def _ref_cb_loss(logits, labels, beta, epsilon):
    """Pure-JAX reference mirroring the torch softmax branch."""
    B, C = logits.shape
    counts = jnp.zeros((C,), jnp.float32).at[labels].add(1.0)
    eff = 1.0 - jnp.power(jnp.float32(beta), counts)
    w = (1.0 - beta) / (eff + 1e-8)
    w = w / jnp.sum(w) * C
    oh = jax.nn.one_hot(labels, C, dtype=jnp.float32)
    oh = (1.0 - epsilon) * oh + epsilon / C
    wi = jnp.sum(w[None, :] * oh, axis=1, keepdims=True)
    p = jax.nn.softmax(logits.astype(jnp.float32), axis=1)
    bce = -(oh * jnp.maximum(jnp.log(p), -100.0)
            + (1.0 - oh) * jnp.maximum(jnp.log1p(-p), -100.0))
    return jnp.mean(wi * bce)


if __name__ == "__main__":
    key = jax.random.PRNGKey(0)
    k1, k2 = jax.random.split(key)

    beta, gamma, epsilon = 0.9999, 2.0, 0.1

    # small shapes consistent with the module: [batch, num_classes]
    batch, num_classes = 8, 16
    logits = jax.random.normal(k1, (batch, num_classes), dtype=jnp.float32)
    labels = jax.random.randint(k2, (batch,), 0, num_classes, dtype=jnp.int32)

    loss = cb_loss(logits, labels, beta=beta, gamma=gamma, epsilon=epsilon,
                   loss_type="softmax")
    jax.block_until_ready(loss)
    ref = _ref_cb_loss(logits, labels, beta, epsilon)
    assert jnp.allclose(loss, ref, rtol=1e-5, atol=1e-5), (loss, ref)

    # second check: batch not a multiple of 8 exercises the padding path
    k3, k4 = jax.random.split(k2)
    b2, c2 = 10, 16
    logits2 = jax.random.normal(k3, (b2, c2), dtype=jnp.float32)
    labels2 = jax.random.randint(k4, (b2,), 0, c2, dtype=jnp.int32)
    loss2 = cb_loss(logits2, labels2, beta=beta, gamma=gamma, epsilon=epsilon,
                    loss_type="softmax")
    jax.block_until_ready(loss2)
    ref2 = _ref_cb_loss(logits2, labels2, beta, epsilon)
    assert jnp.allclose(loss2, ref2, rtol=1e-5, atol=1e-5), (loss2, ref2)

    print("KERNEL_OK")
</pallas_src>

<mosaic_0001>
module attributes {stable_mosaic.version = 11 : i64} {
  func.func @_cb_softmax_bce_kernel(%arg0: i32, %arg1: memref<8x16xf32, #tpu.memory_space<vmem>>, %arg2: memref<8x1xi32, #tpu.memory_space<vmem>>, %arg3: memref<8x1xf32, #tpu.memory_space<vmem>>, %arg4: memref<1x1x1xf32, #tpu.memory_space<vmem>>) attributes {dimension_semantics = [#tpu.dimension_semantics<parallel>], iteration_bounds = array<i64: 1>, scalar_prefetch = 0 : i64, scratch_operands = 0 : i64, tpu.core_type = #tpu.core_type<tc>, window_params = [{transform_indices = @transform_0, window_bounds = array<i64: 8, 16>}, {transform_indices = @transform_1, window_bounds = array<i64: 8, 1>}, {transform_indices = @transform_2, window_bounds = array<i64: 8, 1>}, {transform_indices = @transform_3, window_bounds = array<i64: 1, 1, 1>}]} {
    %c0 = arith.constant 0 : index
    %c0_0 = arith.constant 0 : index
    %0 = vector.load %arg1[%c0, %c0_0] : memref<8x16xf32, #tpu.memory_space<vmem>>, vector<8x16xf32>
    %c0_1 = arith.constant 0 : index
    %c0_2 = arith.constant 0 : index
    %1 = vector.load %arg2[%c0_1, %c0_2] : memref<8x1xi32, #tpu.memory_space<vmem>>, vector<8x1xi32>
    %c0_3 = arith.constant 0 : index
    %c0_4 = arith.constant 0 : index
    %2 = vector.load %arg3[%c0_3, %c0_4] : memref<8x1xf32, #tpu.memory_space<vmem>>, vector<8x1xf32>
    %3 = tpu.iota {dimensions = array<i32: 1>} : vector<8x16xi32>
    %4 = vector.broadcast %1 : vector<8x1xi32> to vector<8x16xi32>
    %5 = arith.cmpi eq, %3, %4 : vector<8x16xi32>
    %6 = arith.extui %5 : vector<8x16xi1> to vector<8x16xi32>
    %7 = arith.sitofp %6 : vector<8x16xi32> to vector<8x16xf32>
    %cst = arith.constant 0.899999976 : f32
    %8 = vector.broadcast %cst : f32 to vector<8x16xf32>
    %9 = arith.mulf %8, %7 : vector<8x16xf32>
    %cst_5 = arith.constant 6.250000e-03 : f32
    %10 = vector.broadcast %cst_5 : f32 to vector<8x16xf32>
    %11 = arith.addf %9, %10 : vector<8x16xf32>
    %cst_6 = arith.constant dense<0xFF800000> : vector<8xf32>
    %12 = vector.multi_reduction <maximumf>, %0, %cst_6 [1] : vector<8x16xf32> to vector<8xf32>
    %13 = vector.shape_cast %12 : vector<8xf32> to vector<8x1xf32>
    %14 = vector.broadcast %13 : vector<8x1xf32> to vector<8x16xf32>
    %15 = arith.subf %0, %14 : vector<8x16xf32>
    %16 = math.exp %15 : vector<8x16xf32>
    %cst_7 = arith.constant dense<0.000000e+00> : vector<8xf32>
    %17 = vector.multi_reduction <add>, %16, %cst_7 [1] : vector<8x16xf32> to vector<8xf32>
    %18 = vector.shape_cast %17 : vector<8xf32> to vector<8x1xf32>
    %19 = math.log %18 : vector<8x1xf32>
    %20 = vector.broadcast %19 : vector<8x1xf32> to vector<8x16xf32>
    %21 = arith.subf %15, %20 : vector<8x16xf32>
    %cst_8 = arith.constant -1.000000e+02 : f32
    %22 = vector.broadcast %cst_8 : f32 to vector<8x16xf32>
    %23 = arith.maximumf %21, %22 : vector<8x16xf32>
    %24 = vector.broadcast %18 : vector<8x1xf32> to vector<8x16xf32>
    %25 = arith.subf %24, %16 : vector<8x16xf32>
    %26 = math.log %25 : vector<8x16xf32>
    %27 = vector.broadcast %19 : vector<8x1xf32> to vector<8x16xf32>
    %28 = arith.subf %26, %27 : vector<8x16xf32>
    %cst_9 = arith.constant -1.000000e+02 : f32
    %29 = vector.broadcast %cst_9 : f32 to vector<8x16xf32>
    %30 = arith.maximumf %28, %29 : vector<8x16xf32>
    %cst_10 = arith.constant 0.000000e+00 : f32
    %31 = vector.broadcast %cst_10 : f32 to vector<8x1xf32>
    %32 = arith.subf %31, %2 : vector<8x1xf32>
    %33 = arith.mulf %11, %23 : vector<8x16xf32>
    %cst_11 = arith.constant 1.000000e+00 : f32
    %34 = vector.broadcast %cst_11 : f32 to vector<8x16xf32>
    %35 = arith.subf %34, %11 : vector<8x16xf32>
    %36 = arith.mulf %35, %30 : vector<8x16xf32>
    %37 = arith.addf %33, %36 : vector<8x16xf32>
    %38 = vector.broadcast %32 : vector<8x1xf32> to vector<8x16xf32>
    %39 = arith.mulf %38, %37 : vector<8x16xf32>
    %cst_12 = arith.constant dense<0.000000e+00> : vector<8xf32>
    %40 = vector.multi_reduction <add>, %39, %cst_12 [1] : vector<8x16xf32> to vector<8xf32>
    %41 = vector.shape_cast %40 : vector<8xf32> to vector<8x1xf32>
    %42 = vector.shape_cast %41 : vector<8x1xf32> to vector<1x8x1xf32>
    %cst_13 = arith.constant dense<0.000000e+00> : vector<1xf32>
    %43 = vector.multi_reduction <add>, %42, %cst_13 [1, 2] : vector<1x8x1xf32> to vector<1xf32>
    %44 = vector.shape_cast %43 : vector<1xf32> to vector<1x1x1xf32>
    %45 = vector.extract %44[0, 0, 0] : f32 from vector<1x1x1xf32>
    %46 = vector.broadcast %45 : f32 to vector<1x1x1xf32>
    %c0_14 = arith.constant 0 : index
    %c0_15 = arith.constant 0 : index
    %c0_16 = arith.constant 0 : index
    %47 = vector.load %arg4[%c0_14, %c0_15, %c0_16] : memref<1x1x1xf32, #tpu.memory_space<vmem>>, vector<1x1x1xf32>
    tpu.vector_store %arg4[%c0_14, %c0_15, %c0_16], %46 {strides = array<i32>} : memref<1x1x1xf32, #tpu.memory_space<vmem>>, vector<1x1x1xf32>,
    return
  }
  func.func @transform_0(%arg0: i32) -> (i32, i32) {
    %c0_i32 = arith.constant 0 : i32
    %c0_i32_0 = arith.constant 0 : i32
    return %arg0, %c0_i32 : i32, i32
  }
  func.func @transform_1(%arg0: i32) -> (i32, i32) {
    %c0_i32 = arith.constant 0 : i32
    %c0_i32_0 = arith.constant 0 : i32
    return %arg0, %c0_i32 : i32, i32
  }
  func.func @transform_2(%arg0: i32) -> (i32, i32) {
    %c0_i32 = arith.constant 0 : i32
    %c0_i32_0 = arith.constant 0 : i32
    return %arg0, %c0_i32 : i32, i32
  }
  func.func @transform_3(%arg0: i32) -> (i32, i32, i32) {
    %c0_i32 = arith.constant 0 : i32
    %c0_i32_0 = arith.constant 0 : i32
    %c0_i32_1 = arith.constant 0 : i32
    return %arg0, %c0_i32, %c0_i32_0 : i32, i32, i32
  }
}

</mosaic_0001>

<bundles_post_ra>
// kernel: tpu_custom_call.1
= control target key start
LH: loop header
LB: loop body
LE: loop exit
PB: predicated region body
PF: predicated region fallthrough
CT: control target
= control target key end

     0   :  { %vm28_vm0 = vcmask 130048   ;;  %s174_s0 = inlined_call_operand.vmem [shape: f32[8,16], index: 0, kind: input, shape index: {}]   ;;  %s175_s1 = inlined_call_operand.vmem [shape: s32[8,1], index: 1, kind: input, shape index: {}]   ;;  %s176_s2 = inlined_call_operand.vmem [shape: f32[8,1], index: 2, kind: input, shape index: {}]   ;;  %s177_s3 = inlined_call_operand.hbm [shape: f32[1,1,1], index: 3, kind: output, shape index: {}]  }
   0x1   :  { %v15_v0 = vld [vmem:[%s174_s0] sm:$0xff] }
   0x2   :  { %8 = vsyncpa [#allocation3], 0  ;;  %v29_v1 = vsel %vm28_vm0, %v15_v0, -inf  ;;  %v16_v2 = vld [vmem:[%s175_s1] sm:$0xff]  ;;  %v127_v4 = vmov 0   ;;  %v18_v11 = vlaneseq  ;;  %v128_v16 = vmov 0.0  }
   0x3   :  { %30 = vmax.xlane.f32.xlu0 %v29_v1  ;;  %v17_v3 = vld [vmem:[%s176_s2] sm:$0xff]  ;;  %95 = vset.pattern.permute.xlu1 %v127_v4  ;;  %vm61_vm2 = vcmask 7168   ;;  %s129_s0 = smov [#allocation2]   ;;  %vm73_vm3 = vcmask 0  }
   0x4   :  { %96 = vset.pattern.permute.xlu0 %v127_v4  ;;  %21 = vperm.xlu1 %95, %v16_v2   ;;  %v47_v5 = vsub.f32 0.0, %v17_v3  ;;  %v19_v12 = vand.u32 127, %v18_v11  ;;  %s81_s1 = sshll.u32 %s129_s0, 4  ;;  %s82_s1 = int_to_ptr.vmem [resolvable:$true] %s81_s1 }
   0x5   :  { %s103_s18 = scalar_lea.vmem %s82_s1, 16  ;;  %s107_s19 = scalar_lea.vmem %s82_s1, 32 }
   0x6   :  { %p104_p0 = scmp.ne.s32.totalorder %s82_s1, %s103_s18  ;;  %p108_p1 = scmp.lt.s32.totalorder %s82_s1, %s82_s1 }
   0x7   :  { %p109_p2 = scmp.lt.s32.totalorder %s107_s19, %s103_s18 }
   0x8   :  { %54 = vperm.xlu1 %95, %v47_v5  }
   0x9   :  { %p110_p3 = por %p109_p2, %p108_p1 }
   0xb   :  { %p111_p4 = pnand %p110_p3, %p104_p0 }
  0x83   :  { %v22_v15 = vpop.permute.xlu1 %21 }
  0x84   :  { %vm23_vm1 = vcmp.eq.s32.totalorder %v19_v12, %v22_v15 }
  0x85   :  { %v89_v17 = vsel %vm23_vm1, 1.0, %v128_v16 }
  0x86   :  { %v26_v18 = vmul.f32 0.9, %v89_v17 }
  0x87   :  { %v55_v32 = vpop.permute.xlu1 %54 }
  0x88   :  { %v27_v21 = vadd.f32 0.00625, %v26_v18 }
  0x8a   :  { %v49_v27 = vsub.f32 1.0, %v27_v21 }
  0x90   :  { %v31_v6 = vpop.xlane.xlu0 %30 }
  0x91   :  { %v32_v7 = vsub.f32 %v15_v0, %v31_v6 }
  0x93   :  { %v33_v8 = vmul.f32 1.442695, %v32_v7 }
  0x95   :  { %97 = vpow2.f32 %v33_v8 }
  0x9f   :  { %v98_v9 = vpop.eup %97 }
  0xa0   :  { %v35_v10 = vsel %vm28_vm0, %v98_v9, 0.0 }
  0xa1   :  { %36 = vadd.xlane.f32.xlu0 %v35_v10 }
 0x12e   :  { %v37_v13 = vpop.xlane.xlu0 %36 }
 0x12f   :  { %99 = vlog2.f32 %v37_v13  ;;  %v42_v14 = vsub.f32 %v37_v13, %v98_v9 }
 0x131   :  { %101 = vlog2.f32 %v42_v14 }
 0x139   :  { %v100_v19 = vpop.eup %99 }
 0x13a   :  { %v39_v20 = vmul.f32 0.6931472, %v100_v19 }
 0x13b   :  { %v102_v22 = vpop.eup %101 }
 0x13c   :  { %v40_v23 = vsub.f32 %v32_v7, %v39_v20  ;;  %v44_v24 = vmul.f32 0.6931472, %v102_v22 }
 0x13e   :  { %v45_v25 = vsub.f32 %v44_v24, %v39_v20  ;;  %v41_v26 = vmax.f32 %v40_v23, -100.0 }
 0x140   :  { %v46_v28 = vmax.f32 %v45_v25, -100.0  ;;  %v48_v29 = vmul.f32 %v41_v26, %v27_v21 }
 0x142   :  { %v50_v30 = vmul.f32 %v49_v27, %v46_v28 }
 0x144   :  { %v51_v31 = vadd.f32 %v50_v30, %v48_v29 }
 0x146   :  { %v57_v33 = vmul.f32 %v55_v32, %v51_v31 }
 0x148   :  { %v58_v34 = vsel %vm28_vm0, %v57_v33, 0.0 }
 0x149   :  { %59 = vadd.xlane.f32.xlu0 %v58_v34 }
 0x1d6   :  { %v60_v35 = vpop.xlane.xlu0 %59 }
 0x1d7   :  { %v62_v36 = vsel %vm61_vm2, %v60_v35, 0.0 }
 0x1d8   :  { %63 = vadd.xlane.f32.xlu1 %v62_v36 }
 0x265   :  { %v64_v37 = vpop.xlane.xlu1 %63 }
 0x266   :  { %v65_v38 = vrot.slane %v64_v37, 4 }
 0x268   :  { %v66_v39 = vadd.f32 %v65_v38, %v64_v37 }
 0x26a   :  { %v67_v40 = vrot.slane %v66_v39, 2 }
 0x26c   :  { %v68_v41 = vadd.f32 %v67_v40, %v66_v39 }
 0x26e   :  { %v69_v42 = vrot.slane %v68_v41, 1 }
 0x270   :  { %v70_v43 = vadd.f32 %v69_v42, %v68_v41 }
 0x272   :  { %90 = vpush %v70_v43 }
 0x2a3   :  { %s91_s2 = spop %90 }
 0x2a4   :  { %v72_v44 = vstv %s91_s2 }
 0x2a5   :  { %74 = vst.msk [vmem:[#allocation2] sm:$0x1] %vm73_vm3, %v72_v44 }
 0x2a6   :  { %114 = shalt.err (!%p111_p4)
}
 0x2a7   :  { %s115_s22 = scalar_lea.hbm %s177_s3, 16 }
 0x2a8   :  { %p116_p5 = scmp.ne.s32.totalorder %s177_s3, %s115_s22  ;;  %p119_p6 = scmp.lt.u32.totalorder %s115_s22, %s177_s3 }
 0x2aa   :  { %p121_p7 = pnand %p119_p6, %p116_p5 }
 0x2ac   :  { %124 = shalt.err (!%p121_p7)
}
 0x2ad   :  { %84 = dma.vmem_to_hbm [thread:$0]  %s82_s1, 16, %s177_s3, [#allocation3]  }
 0x2ae   :  { %125 = dma.done.wait [#allocation3], 16  }
 0x2af   :  { %126 = vsyncadd [#allocation3], 4294967280 }
 0x2b0   :  { %88 = vsyncpa [#allocation3], 1 }

</bundles_post_ra>
